<compile_context>
chip_gen: v7x
topology: tpu7x:2x2x1
jax: 0.10.0
libtpu: 0.0.40
codegen_flags: <defaults>
</compile_context>

<pallas_src>
import functools

import numpy as np
import jax
import jax.numpy as jnp
from jax.experimental import pallas as pl
from jax.experimental.pallas import tpu as pltpu


def build_pe_table(d_model: int, max_seq_len: int) -> jnp.ndarray:
    """Exact replica of the PyTorch __init__ table, shape [max_seq_len+1, d_model]."""
    pos = np.arange(max_seq_len, dtype=np.float32)[:, None]            # [S, 1]
    j = np.arange(d_model)                                              # [D]
    angles = (pos / np.power(10000.0, 2.0 * (j // 2) / d_model)).astype(np.float32)
    table = np.empty_like(angles)
    table[:, 0::2] = np.sin(angles[:, 0::2])
    table[:, 1::2] = np.cos(angles[:, 1::2])
    pad_row = np.zeros((1, d_model), dtype=np.float32)
    return jnp.asarray(np.concatenate([pad_row, table], axis=0))        # [S+1, D]


def _round_up(x: int, m: int) -> int:
    return ((x + m - 1) // m) * m


def _pe_kernel(lens_ref, table_ref, out_ref, *, per_row: int):
    # lens_ref : SMEM int32 [batch]   (scalar-prefetched lengths)
    # table_ref: VMEM f32  [TM, W]    PE data for this sequence tile (batch-invariant)
    # out_ref  : VMEM      [TM, W]    this (seq_tile, batch) output tile (batch squeezed)
    #
    # Element (r, c) of this tile holds flat index  j*TM*W + r*W + c  of the
    # per-batch slab; it must be zeroed iff that flat index >= length * per_row.
    j = pl.program_id(0)          # sequence-tile index (outer axis)
    b = pl.program_id(1)          # batch index (inner axis -> table tile stays resident)
    length = lens_ref[b]
    tm, w = out_ref.shape
    base = j * (tm * w)
    limit = length * per_row

    # Fast path: tile entirely inside the valid region -> straight copy.
    @pl.when(base + tm * w <= limit)
    def _():
        out_ref[...] = table_ref[...].astype(out_ref.dtype)

    # Boundary / padding tiles: masked select (VALU filler; kernel is store-bound).
    @pl.when(base + tm * w > limit)
    def _():
        row = jax.lax.broadcasted_iota(jnp.int32, (tm, w), 0)
        col = jax.lax.broadcasted_iota(jnp.int32, (tm, w), 1)
        flat = base + row * w + col
        out_ref[...] = jnp.where(flat < limit, table_ref[...], 0.0).astype(out_ref.dtype)

    # Dropout with p=0.0 is the identity; nothing further to do.
    # TODO(synk): nonzero dropout would need pltpu.prng_seed / stateful_bernoulli.


def _choose_tm(rows_total: int, w: int, out_bytes: int, batch: int) -> int:
    """Pick the tile row count from a VMEM budget; keep megacore busy if batch==1."""
    sublane = 16 if out_bytes < 4 else 8     # bf16 packs 16 sublanes per vreg
    # Double-buffered footprint: 2 table blocks (f32) + 2 output blocks <= ~10 MiB.
    budget = 10 * 1024 * 1024
    tm = budget // (2 * w * (4 + out_bytes))
    tm = max((tm // sublane) * sublane, sublane)
    if tm >= rows_total:
        tm = rows_total                      # full-dim block is always legal
    # v7x megacore: make sure the sharded grid has >= 2 iterations when batch == 1.
    if batch == 1 and tm == rows_total and rows_total >= 2 * sublane:
        tm = _round_up(rows_total // 2, sublane)
    return tm


def positional_encoding(inputs_len, pe_table, max_len=None, *, out_dtype=jnp.float32):
    """inputs_len: host int array/list of per-sequence lengths (static, like the torch
    module which calls torch.max on it).  Returns [batch, max_len, d_model]."""
    lens_host = np.asarray(inputs_len, dtype=np.int32)
    batch = int(lens_host.shape[0])
    if max_len is None:
        max_len = int(lens_host.max())
    max_len = int(max_len)
    if max_len < int(lens_host.max()):
        raise ValueError(f"max_len={max_len} < max(inputs_len)={int(lens_host.max())}; "
                         f"the PyTorch module never truncates.")
    d_model = int(pe_table.shape[1])
    max_seq_len = int(pe_table.shape[0]) - 1
    if max_len > max_seq_len:
        raise ValueError(f"max_len={max_len} exceeds the positional-encoding table "
                         f"(max_seq_len={max_seq_len}).")
    if max_len == 0:
        return jnp.zeros((batch, 0, d_model), dtype=out_dtype)

    out_bytes = jnp.dtype(out_dtype).itemsize
    lens = jnp.asarray(lens_host)
    rows = pe_table[1:max_len + 1]                       # [max_len, d_model]; position i -> row i

    if d_model % 128 == 0:
        # Layout R: write the exact output array — lane-dense, no padding, no post-copy.
        table = rows
        w = d_model
        rows_total = max_len
        out_shape3 = (batch, max_len, d_model)
        strip = 0
    else:
        # Layout F: flatten the per-batch slab row-major to a lane-dense (rows, 128) slab.
        n = max_len * d_model
        n_pad = _round_up(n, 128)
        flat = rows.reshape(-1)
        if n_pad != n:
            flat = jnp.pad(flat, (0, n_pad - n))         # < 128 padded elements, zero-valued
        table = flat.reshape(n_pad // 128, 128)
        w = 128
        rows_total = n_pad // 128
        out_shape3 = (batch, rows_total, 128)
        strip = n_pad - n

    tm = _choose_tm(rows_total, w, out_bytes, batch)
    n_seq_tiles = pl.cdiv(rows_total, tm)                # ragged last tile; no seq padding

    grid_spec = pltpu.PrefetchScalarGridSpec(
        num_scalar_prefetch=1,
        # batch innermost: the table block index (j, 0) only changes on the outer
        # axis, so each table tile is read from HBM once per seq tile.
        grid=(n_seq_tiles, batch),
        in_specs=[pl.BlockSpec((tm, w), lambda j, b, lens_r: (j, 0))],
        # Leading batch dim squeezed (None) -> kernel works on a 2-D tile.
        out_specs=pl.BlockSpec((None, tm, w), lambda j, b, lens_r: (b, j, 0)),
    )

    out = pl.pallas_call(
        functools.partial(_pe_kernel, per_row=d_model),
        out_shape=jax.ShapeDtypeStruct(out_shape3, out_dtype),
        grid_spec=grid_spec,
        compiler_params=pltpu.CompilerParams(
            dimension_semantics=("parallel", "parallel")),
    )(lens, table)

    if d_model % 128 == 0:
        return out                                       # exact shape, nothing to strip
    if strip == 0:
        return out.reshape(batch, max_len, d_model)      # contiguous reshape, no copy
    return (out.reshape(batch, rows_total * 128)[:, :max_len * d_model]
               .reshape(batch, max_len, d_model))


def _reference(lens_host, pe_table):
    max_len = int(lens_host.max())
    table_np = np.asarray(pe_table)
    d_model = table_np.shape[1]
    ref = np.zeros((lens_host.shape[0], max_len, d_model), dtype=np.float32)
    for b, L in enumerate(lens_host):
        pos = list(range(1, int(L) + 1)) + [0] * (max_len - int(L))
        ref[b] = table_np[np.asarray(pos)]
    return ref


if __name__ == "__main__":
    key = jax.random.PRNGKey(0)
    k1, k2 = jax.random.split(key)

    # Case 1: small lane-unaligned d_model -> flattened lane-dense layout.
    d_model, max_seq_len, batch = 32, 16, 2
    lens_host = np.asarray(jax.random.randint(k1, (batch,), 1, max_seq_len + 1), np.int32)
    pe_table = build_pe_table(d_model, max_seq_len)
    out = jax.block_until_ready(positional_encoding(lens_host, pe_table))
    np.testing.assert_allclose(np.asarray(out), _reference(lens_host, pe_table),
                               rtol=1e-6, atol=1e-6)

    # Case 2: 128-aligned d_model -> direct row layout (no padding, no post-copy).
    d_model2, max_seq_len2, batch2 = 128, 24, 3
    lens_host2 = np.asarray(jax.random.randint(k2, (batch2,), 1, max_seq_len2 + 1), np.int32)
    pe_table2 = build_pe_table(d_model2, max_seq_len2)
    out2 = jax.block_until_ready(positional_encoding(lens_host2, pe_table2))
    np.testing.assert_allclose(np.asarray(out2), _reference(lens_host2, pe_table2),
                               rtol=1e-6, atol=1e-6)

    print("KERNEL_OK")
</pallas_src>

<mosaic_0001>
module attributes {stable_mosaic.version = 11 : i64} {
  func.func @_pe_kernel(%arg0: i32, %arg1: i32, %arg2: memref<2xi32, #tpu.memory_space<smem>>, %arg3: memref<4x128xf32, #tpu.memory_space<vmem>>, %arg4: memref<1x4x128xf32, #tpu.memory_space<vmem>>) attributes {dimension_semantics = [#tpu.dimension_semantics<parallel>, #tpu.dimension_semantics<parallel>], iteration_bounds = array<i64: 1, 2>, scalar_prefetch = 1 : i64, scratch_operands = 0 : i64, tpu.core_type = #tpu.core_type<tc>, window_params = [{transform_indices = @transform_0, window_bounds = array<i64: 4, 128>}, {transform_indices = @transform_1, window_bounds = array<i64: 1, 4, 128>}]} {
    %0 = arith.index_cast %arg1 : i32 to index
    %1 = memref.load %arg2[%0] : memref<2xi32, #tpu.memory_space<smem>>
    %c512_i32 = arith.constant 512 : i32
    %2 = arith.muli %arg0, %c512_i32 : i32
    %c32_i32 = arith.constant 32 : i32
    %3 = arith.muli %1, %c32_i32 : i32
    %c512_i32_0 = arith.constant 512 : i32
    %4 = arith.addi %2, %c512_i32_0 : i32
    %5 = arith.cmpi sle, %4, %3 : i32
    %6 = arith.extui %5 : i1 to i32
    %c0_i32 = arith.constant 0 : i32
    %7 = arith.cmpi ne, %6, %c0_i32 : i32
    scf.if %7 {
      %c0 = arith.constant 0 : index
      %c0_3 = arith.constant 0 : index
      %12 = vector.load %arg3[%c0, %c0_3] : memref<4x128xf32, #tpu.memory_space<vmem>>, vector<4x128xf32>
      %c0_4 = arith.constant 0 : index
      %c0_5 = arith.constant 0 : index
      %c0_6 = arith.constant 0 : index
      %13 = vector.load %arg4[%c0_4, %c0_5, %c0_6] : memref<1x4x128xf32, #tpu.memory_space<vmem>>, vector<1x4x128xf32>
      %14 = vector.shape_cast %13 : vector<1x4x128xf32> to vector<4x128xf32>
      %15 = vector.shape_cast %12 : vector<4x128xf32> to vector<1x4x128xf32>
      tpu.vector_store %arg4[%c0_4, %c0_5, %c0_6], %15 {strides = array<i32>} : memref<1x4x128xf32, #tpu.memory_space<vmem>>, vector<1x4x128xf32>,
    } else {
    }
    %c512_i32_1 = arith.constant 512 : i32
    %8 = arith.addi %2, %c512_i32_1 : i32
    %9 = arith.cmpi sgt, %8, %3 : i32
    %10 = arith.extui %9 : i1 to i32
    %c0_i32_2 = arith.constant 0 : i32
    %11 = arith.cmpi ne, %10, %c0_i32_2 : i32
    scf.if %11 {
      %12 = tpu.iota {dimensions = array<i32: 0>} : vector<4x128xi32>
      %13 = tpu.iota {dimensions = array<i32: 1>} : vector<4x128xi32>
      %c128_i32 = arith.constant 128 : i32
      %14 = vector.broadcast %c128_i32 : i32 to vector<4x128xi32>
      %15 = arith.muli %12, %14 : vector<4x128xi32>
      %16 = vector.broadcast %2 : i32 to vector<4x128xi32>
      %17 = arith.addi %16, %15 : vector<4x128xi32>
      %18 = arith.addi %17, %13 : vector<4x128xi32>
      %19 = vector.broadcast %3 : i32 to vector<4x128xi32>
      %20 = arith.cmpi slt, %18, %19 : vector<4x128xi32>
      %c0 = arith.constant 0 : index
      %c0_3 = arith.constant 0 : index
      %21 = vector.load %arg3[%c0, %c0_3] : memref<4x128xf32, #tpu.memory_space<vmem>>, vector<4x128xf32>
      %cst = arith.constant 0.000000e+00 : f32
      %22 = vector.broadcast %cst : f32 to vector<4x128xf32>
      %23 = arith.select %20, %21, %22 : vector<4x128xi1>, vector<4x128xf32>
      %c0_4 = arith.constant 0 : index
      %c0_5 = arith.constant 0 : index
      %c0_6 = arith.constant 0 : index
      %24 = vector.load %arg4[%c0_4, %c0_5, %c0_6] : memref<1x4x128xf32, #tpu.memory_space<vmem>>, vector<1x4x128xf32>
      %25 = vector.shape_cast %24 : vector<1x4x128xf32> to vector<4x128xf32>
      %26 = vector.shape_cast %23 : vector<4x128xf32> to vector<1x4x128xf32>
      tpu.vector_store %arg4[%c0_4, %c0_5, %c0_6], %26 {strides = array<i32>} : memref<1x4x128xf32, #tpu.memory_space<vmem>>, vector<1x4x128xf32>,
    } else {
    }
    return
  }
  func.func @transform_0(%arg0: i32, %arg1: i32, %arg2: memref<2xi32, #tpu.memory_space<smem>>) -> (i32, i32) {
    %c0_i32 = arith.constant 0 : i32
    %c0_i32_0 = arith.constant 0 : i32
    return %arg0, %c0_i32 : i32, i32
  }
  func.func @transform_1(%arg0: i32, %arg1: i32, %arg2: memref<2xi32, #tpu.memory_space<smem>>) -> (i32, i32, i32) {
    %c0_i32 = arith.constant 0 : i32
    %c0_i32_0 = arith.constant 0 : i32
    return %arg1, %arg0, %c0_i32 : i32, i32, i32
  }
}

</mosaic_0001>

<bundles_post_ra>
// kernel: tpu_custom_call.1
= control target key start
LH: loop header
LB: loop body
LE: loop exit
PB: predicated region body
PF: predicated region fallthrough
CT: control target
= control target key end

     0   :  { %s623_s0 = inlined_call_operand.hbm [shape: s32[2], index: 0, kind: input, shape index: {}]   ;;  %s624_s1 = inlined_call_operand.hbm [shape: f32[4,128], index: 1, kind: input, shape index: {}]   ;;  %s625_s2 = inlined_call_operand.hbm [shape: f32[2,4,128], index: 2, kind: output, shape index: {}]  }
   0x1   :  { %s329_s11 = scalar_lea.hbm %s623_s0, 16 }
   0x2   :  { %p330_p0 = scmp.ne.s32.totalorder %s623_s0, %s329_s11  ;;  %p333_p1 = scmp.lt.u32.totalorder %s329_s11, %s623_s0 }
   0x4   :  { %p335_p2 = pnand %p333_p1, %p330_p0 }
   0x6   :  { %338 = shalt.err (!%p335_p2)  }
   0x7   :  { %s453_s16 = smov [#allocation3]  }
   0x8   :  { %8 = dma.hbm_to_smem %s623_s0, 16, %s453_s16, [#allocation2] }
   0x9   :  { %419 = dma.done.wait [#allocation2], 16 }
   0xa   :  { %420 = vsyncadd [#allocation2], 4294967280 }
   0xb   :  { %10 = sfence }
   0xc   :  { %11 = vsyncpa [#allocation5], 0 }
   0xd   :  { %12 = vsyncpa [#allocation6], 0 }
   0xe   :  { %14 = vsyncpa [#allocation6 + $0x1], 0  ;;  %s483_s19 = smov 0   ;;  %s485_s20 = smov 0  }
   0xf   :  { %s487_s21 = smov 0   ;;  %s489_s22 = smov 0  }
  0x10   :  { %s491_s23 = smov 0   ;;  %s493_s24 = smov 0  }
  0x11 LB: > { %s246_s0 = sadd.s32 4294967295, %s451_s24   ;;  %s247_s25 = sadd.s32 4294967294, %s451_s24   ;;  %s451_s24 = sphi %s493_s24, %s20_s24   ;;  %s447_s23 = sphi %s491_s23, %s643_s23   ;;  %s443_s22 = sphi %s489_s22, %s642_s22   ;;  %s439_s21 = sphi %s487_s21, %s641_s21   ;;  %s435_s20 = sphi %s485_s20, %s640_s20   ;;  %s431_s19 = sphi %s483_s19, %s639_s19  }
  0x12   : > { %s29_s26 = sadd.s32 1, %s447_s23  ;;  %s67_s27 = sadd.s32 1, %s439_s21 }
  0x13   : > { %p30_p3 = scmp.ge.s32.totalorder %s29_s26, 2  ;;  %p77_p4 = scmp.ne.s32.totalorder %s439_s21, %s435_s20 }
  0x14   : > { %p78_p5 = scmp.eq.s32.totalorder %s246_s0, 1  ;;  %p83_p6 = scmp.ne.s32.totalorder %s435_s20, %s431_s19 }
  0x15   : > { %s645_s26 = smov (%p30_p3, %s29_s26), 0  ;;  %p84_p8 = scmp.eq.s32.totalorder %s247_s25, 1 }
  0x16   : > { %p523_p7 = por %p78_p5, %p77_p4  ;;  %s62_s29 = ssub.s32 %s447_s23, %s645_s26 }
  0x17   : > { %p248_p9 = scmp.ge.s32.totalorder %s451_s24, 1  ;;  %p65_p10 = scmp.eq.s32.totalorder %s62_s29, 0 }
  0x18   : > { %s630_s28 = scalar_select %p523_p7, 1, 0 }
  0x19   : > { %p530_p11 = por %p84_p8, %p83_p6  ;;  %p91_p12 = scmp.lt.s32.totalorder %s451_s24, 3 }
  0x1a   : > { %s536_s3 = scalar_select %p65_p10, %s439_s21, %s67_s27  }
  0x1b   : > { %s631_s30 = scalar_select %p530_p11, 1, 0 }
  0x1c   : > { %p538_p13 = pnand %p248_p9, %p91_p12  ;;  %p542_p0 = scmp.eq.s32.totalorder %s246_s0, 0 }
  0x1d   : > { %s454_s6 = smov [#allocation4]   ;;  %s339_s11 = scalar_lea.hbm %s624_s1, 64 }
  0x1e   : > { %s632_s4 = scalar_select %p538_p13, 1, 0 }
  0x1f   : > { %s633_s5 = scalar_select %p542_p0, 1, 0 }
  0x20   : > { %p268_p1 = pneg %p538_p13  ;;  %s106_s7 = sshll.u32 %s454_s6, 4  ;;  %s107_s7 = int_to_ptr.vmem [resolvable:$true] %s106_s7 }
  0x21   : > { %p340_p3 = scmp.ne.s32.totalorder %s624_s1, %s339_s11  ;;  %p346_p8 = scmp.lt.u32.totalorder %s339_s11, %s624_s1 }
  0x22   : > { %p550_p2 = pnand %p542_p0, %p268_p1 }
  0x24   : > { %p341_p4 = pneg %p550_p2 }
  0x26   : > { %p342_p5 = pnand %p341_p4, %p340_p3 }
  0x28   : > { %p343_p6 = pneg %p342_p5 }
  0x2a   : > { %p348_p9 = pnand %p346_p8, %p343_p6 }
  0x2c   : > { %351 = shalt.err (!%p348_p9)
}
  0x2d   : > { %s352_s16 = scalar_lea.vmem %s107_s7, 64  ;;  %p360_p11 = scmp.lt.s32.totalorder %s107_s7, %s107_s7 }
  0x2e   : > { %p353_p10 = scmp.ne.s32.totalorder %s107_s7, %s352_s16  ;;  %p361_p7 = scmp.lt.s32.totalorder %s352_s16, %s352_s16 }
  0x30   : > { %p355_p12 = pnand %p353_p10, %p341_p4  ;;  %p362_p0 = por %p361_p7, %p360_p11 }
  0x32   : > { %p356_p1 = pneg %p355_p12 }
  0x34   : > { %p363_p13 = pnand %p362_p0, %p356_p1 }
  0x36   : > { %366 = shalt.err (!%p363_p13)
}
  0x37   : > { %271 = dma.hbm_to_vmem [thread:$0]  (!%p550_p2), %s624_s1, 64, %s107_s7, [#allocation5]  }
  0x38   : > { %p635_p3 = scmp.ne.s32.totalorder %s632_s4, 0 }
  0x39   : > { %p636_p5 = scmp.ne.s32.totalorder (!%p635_p3), %s633_s5, 0 }
  0x3a   : > { %119 = sbr.rel (%p635_p3) target bundleno = 119 (0x77), region = 24 }
  0x41   : > { %422 = dma.done.wait (%p636_p5), [#allocation5], 64  }
  0x42   : > { %424 = vsyncadd (%p636_p5), [#allocation5], 4294967232  ;;  %s131_s0 = sand.u32 1, %s435_s20   ;;  %s134_s25 = sld [smem:[#allocation3 + %s443_s22]] }
  0x43   : > { %s252_s27 = sshll.u32 %s131_s0, 2 }
  0x44   : > { %s133_s6 = scalar_lea.vmem [#allocation7], %s252_s27 }
  0x48   : > { %s253_s29 = sshll.u32 %s134_s25, 5 }
  0x49   : > { %p255_p7 = scmp.lt.s32.totalorder %s253_s29, 512 }
  0x4a   : > { %v142_v0 = vld [vmem:[#allocation4] sm:$0xf] (!%p255_p7) }
  0x4b   : > { %141 = sbr.rel (%p255_p7) target bundleno = 82 (0x52), region = 32  ;;  %143 = vst [vmem:[%s133_s6] sm:$0xf] (!%p255_p7), %v142_v0 }
  0x52 PF: > { %p257_p11 = scmp.ge.s32.totalorder %s253_s29, 512 }
  0x53   : > { %v148_v1 = vlaneseq (!%p257_p11)  ;;  %v156_v5 = vstv (!%p257_p11), %s253_s29  ;;  %v158_v7 = vld [vmem:[#allocation4] sm:$0xf] (!%p257_p11) }
  0x54   : > { %147 = sbr.rel (%p257_p11) target bundleno = 94 (0x5e), region = 36 }
  0x55   : > { %v149_v2 = vshrl.u32 (!%p257_p11), %v148_v1, 7  ;;  %v151_v3 = vand.u32 (!%p257_p11), 127, %v148_v1 }
  0x57   : > { %v152_v4 = vmul.u32 (!%p257_p11), 128, %v149_v2 }
  0x59   : > { %v155_v6 = vadd.s32 (!%p257_p11), %v152_v4, %v151_v3 }
  0x5b   : > { %vm157_vm0 = vcmp.lt.s32.totalorder %v155_v6, %v156_v5 }
  0x5c   : > { %v159_v8 = vsel %vm157_vm0, %v158_v7, 0.0 }
  0x5d   : > { %160 = vst [vmem:[%s133_s6] sm:$0xf] %v159_v8 }
  0x5e PF: > { %s259_s4 = sshll.u32 %s443_s22, 6  ;;  %s176_s9 = sshll.u32 %s133_s6, 4  ;;  %s177_s9 = int_to_ptr.vmem [resolvable:$true] %s176_s9 }
  0x5f   : > { %s582_s8 = scalar_lea.hbm %s625_s2, %s259_s4  ;;  %s162_s10 = scalar_lea.sflag [#allocation6], %s131_s0 }
  0x60   : > { %s367_s11 = scalar_lea.vmem %s177_s9, 64  ;;  %p637_p0 = scmp.ne.s32.totalorder %s630_s28, 0 }
  0x61   : > { %p368_p13 = scmp.ne.s32.totalorder %s177_s9, %s367_s11  ;;  %s455_s12 = smov [#allocation7]  }
  0x62   : > { %s371_s13 = sshll.u32 %s455_s12, 4  ;;  %s372_s13 = int_to_ptr.vmem [resolvable:$false] %s371_s13 }
  0x63   : > { %p369_p2 = pnand %p368_p13, %p637_p0  ;;  %s373_s14 = scalar_lea.vmem %s372_s13, 128 }
  0x64   : > { %p374_p6 = scmp.lt.s32.totalorder %s177_s9, %s372_s13  ;;  %p375_p8 = scmp.lt.s32.totalorder %s373_s14, %s367_s11 }
  0x65   : > { %p370_p4 = pneg %p369_p2 }
  0x66   : > { %p376_p9 = por %p375_p8, %p374_p6 }
  0x68   : > { %p377_p10 = pnand %p376_p9, %p370_p4 }
  0x6a   : > { %380 = shalt.err (!%p377_p10)
}
  0x6b   : > { %s381_s22 = scalar_lea.hbm %s582_s8, 64  ;;  %s385_s17 = scalar_lea.hbm %s625_s2, 128 }
  0x6c   : > { %p382_p12 = scmp.ne.s32.totalorder %s582_s8, %s381_s22  ;;  %p386_p5 = scmp.lt.u32.totalorder %s582_s8, %s625_s2 }
  0x6d   : > { %p387_p7 = scmp.lt.u32.totalorder %s385_s17, %s381_s22  ;;  %p389_p13 = scmp.lt.u32.totalorder %s381_s22, %s582_s8 }
  0x6e   : > { %p383_p1 = pnand %p382_p12, %p637_p0 }
  0x6f   : > { %p388_p11 = por %p387_p7, %p386_p5 }
  0x70   : > { %p384_p3 = pneg %p383_p1 }
  0x71   : > { %p390_p2 = por %p389_p13, %p388_p11 }
  0x73   : > { %p391_p4 = pnand %p390_p2, %p384_p3 }
  0x75   : > { %394 = shalt.err (!%p391_p4)
}
  0x76   : > { %266 = dma.vmem_to_hbm [thread:$0]  (%p637_p0), %s177_s9, 64, %s582_s8, %s162_s10  }
  0x77 PF: > { %p278_p6 = scmp.ge.s32.totalorder %s451_s24, 2  ;;  %s188_s25 = sand.u32 1, %s431_s19  }
  0x78   : > { %p638_p8 = scmp.ne.s32.totalorder %s631_s30, 0  ;;  %s189_s27 = scalar_lea.sflag [#allocation6], %s188_s25 }
  0x7a   : > { %p273_p9 = pnand %p278_p6, %p638_p8 }
  0x7c   : > { %426 = dma.done.wait (!%p273_p9), %s189_s27, 64  }
  0x7d   : > { %428 = vsyncadd (!%p273_p9), %s189_s27, 4294967232  ;;  %s20_s24 = sadd.s32 1, %s451_s24   ;;  %s639_s19 = smov %s435_s20 }
  0x7e   : > { %p17_p10 = scmp.ge.s32.totalorder %s20_s24, 4   ;;  %s640_s20 = smov %s439_s21 }
  0x7f   : > { %s641_s21 = smov %s536_s3  ;;  %s642_s22 = smov %s447_s23 }
  0x80   : > { %s643_s23 = smov %s645_s26  ;;  %19 = sbr.rel (!%p17_p10) target bundleno = 17 (0x11), region = 70 }
  0x87   :  { %194 = vsyncpa [#allocation5], 1 }
  0x88   :  { %196 = vsyncpa [#allocation5 + $0x1], 1 }
  0x89   :  { %197 = vsyncpa [#allocation6], 1 }
  0x8a   :  { %199 = vsyncpa [#allocation6 + $0x1], 1 }

</bundles_post_ra>
